<compile_context>
chip_gen: v7x
topology: tpu7x:2x2x1
jax: 0.10.0
libtpu: 0.0.40
codegen_flags: <defaults>
</compile_context>

<pallas_src>
import math
import functools

import jax
import jax.numpy as jnp
import numpy as np
from jax.experimental import pallas as pl
from jax.experimental.pallas import tpu as pltpu

POS_OCTAVES = 8
POS_START_OCTAVE = 0
RAY_OCTAVES = 4
RAY_START_OCTAVE = 0
COORD_DIM = 3

POS_CH = COORD_DIM * POS_OCTAVES            # 24
RAY_CH = COORD_DIM * RAY_OCTAVES            # 12
OUT_CH = 2 * POS_CH + 2 * RAY_CH            # 72


def _multipliers(num_octaves, start_octave):
    octs = np.arange(start_octave, start_octave + num_octaves).astype(np.float32)
    return (np.float32(2.0) ** octs) * np.float32(math.pi)   # (num_octaves,) f32


# (12, 1) column: [pos octaves (8), ray octaves (4)].
_MULT_COL = np.concatenate(
    [_multipliers(POS_OCTAVES, POS_START_OCTAVE),
     _multipliers(RAY_OCTAVES, RAY_START_OCTAVE)]).reshape(-1, 1)   # (12, 1) f32


def _raypos_kernel(mult_ref, coords_ref, out_ref):
    # mult_ref:   (12, 1)  -- [2^k*pi for pos octaves; 2^k*pi for ray octaves]
    # coords_ref: (6, TM)  -- rows 0:3 = pos xyz, rows 3:6 = ray xyz; rows of the
    #                         original (M, 3) problem live on the 128-lane axis.
    # out_ref:    (TM, 72) -- row-major output block.
    pmul = mult_ref[0:POS_OCTAVES, :]                              # (8, 1)
    rmul = mult_ref[POS_OCTAVES:POS_OCTAVES + RAY_OCTAVES, :]      # (4, 1)

    # In-kernel octave expansion via sublane broadcast:
    #   scaled_p row d*8 + k = pos[d] * 2^k * pi  (dim-major, octave-minor,
    #   matching torch's reshape order).
    scaled_p = jnp.concatenate(
        [pmul * coords_ref[d:d + 1, :] for d in range(COORD_DIM)],
        axis=0)                                                    # (24, TM)
    scaled_r = jnp.concatenate(
        [rmul * coords_ref[COORD_DIM + d:COORD_DIM + d + 1, :]
         for d in range(COORD_DIM)],
        axis=0)                                                    # (12, TM)

    # Channel order matches the module: [sin(pos), cos(pos), sin(rays), cos(rays)].
    # All transcendentals run lane-dense (M on the 128-lane axis).
    enc_t = jnp.concatenate(
        [jnp.sin(scaled_p), jnp.cos(scaled_p),
         jnp.sin(scaled_r), jnp.cos(scaled_r)], axis=0)            # (72, TM)

    # Cast to the output dtype *before* the transpose (halves XLU + store bytes
    # in the bf16 case), then one in-kernel transpose + one block store.
    out_ref[...] = enc_t.astype(out_ref.dtype).T


def _round_up(x, m):
    return ((x + m - 1) // m) * m


@functools.partial(jax.jit, static_argnames=("tm_cap", "out_dtype"))
def ray_pos_encoder(pos, rays, *, tm_cap=8192, out_dtype=jnp.float32):
    """pos, rays: (..., 3) float -> (..., 72) positional encoding."""
    assert tm_cap % 128 == 0, "row-tile cap must be a multiple of 128 lanes"
    lead_shape = pos.shape[:-1]
    assert pos.shape[-1] == COORD_DIM and rays.shape[-1] == COORD_DIM
    assert rays.shape[:-1] == lead_shape

    # Flatten leading dims, merge pos/rays into one (6, M) array so rows land on
    # the lane axis and there is a single input DMA stream.
    pos2 = pos.reshape(-1, COORD_DIM).astype(jnp.float32)        # (M, 3)
    rays2 = rays.reshape(-1, COORD_DIM).astype(jnp.float32)      # (M, 3)
    coords = jnp.concatenate([pos2, rays2], axis=-1).T           # (6, M)
    m = coords.shape[1]

    # Row tile: biggest multiple of 128 up to tm_cap.  No wrapper padding --
    # the ragged last block is handled by Pallas (masked output stores).
    tm = min(tm_cap, _round_up(m, 128))
    n_blocks = pl.cdiv(m, tm)

    mult = jnp.asarray(_MULT_COL)                                # (12, 1)

    out2 = pl.pallas_call(
        _raypos_kernel,
        out_shape=jax.ShapeDtypeStruct((m, OUT_CH), out_dtype),
        grid_spec=pltpu.PrefetchScalarGridSpec(
            num_scalar_prefetch=0,
            grid=(n_blocks,),
            in_specs=[
                pl.BlockSpec((POS_OCTAVES + RAY_OCTAVES, 1), lambda i: (0, 0)),
                pl.BlockSpec((2 * COORD_DIM, tm), lambda i: (0, i)),
            ],
            out_specs=pl.BlockSpec((tm, OUT_CH), lambda i: (i, 0)),
        ),
        compiler_params=pltpu.CompilerParams(
            dimension_semantics=("parallel",),
            vmem_limit_bytes=40 * 1024 * 1024),
    )(mult, coords)

    return out2.reshape(*lead_shape, OUT_CH)


def _reference(pos, rays):
    """Pure-JAX reference reproducing the torch semantics exactly."""
    def enc(coords, num_octaves, start_octave):
        shape, dim = coords.shape[:-1], coords.shape[-1]
        mult = jnp.asarray(_multipliers(num_octaves, start_octave))
        scaled = coords[..., None].astype(jnp.float32) * mult   # (..., dim, n_oct)
        sines = jnp.sin(scaled).reshape(*shape, dim * num_octaves)
        cosines = jnp.cos(scaled).reshape(*shape, dim * num_octaves)
        return jnp.concatenate([sines, cosines], axis=-1)

    pos_enc = enc(pos, POS_OCTAVES, POS_START_OCTAVE)
    ray_enc = enc(rays, RAY_OCTAVES, RAY_START_OCTAVE)
    return jnp.concatenate([pos_enc, ray_enc], axis=-1)


if __name__ == "__main__":
    key = jax.random.PRNGKey(0)
    k1, k2, k3, k4 = jax.random.split(key, 4)

    # Small shapes consistent with the module: (batch, n_rays, 3) coordinates.
    # Positions in [-1, 1], rays as unit direction vectors (realistic inputs).
    batch, n_rays = 2, 16
    pos = jax.random.uniform(k1, (batch, n_rays, 3), jnp.float32,
                             minval=-1.0, maxval=1.0)
    rays = jax.random.normal(k2, (batch, n_rays, 3), jnp.float32)
    rays = rays / jnp.linalg.norm(rays, axis=-1, keepdims=True)

    out = jax.block_until_ready(ray_pos_encoder(pos, rays))
    assert out.shape == (batch, n_rays, OUT_CH), out.shape
    ref = jax.block_until_ready(_reference(pos, rays))
    # Tolerance allows ulp-level sin/cos range-reduction differences between the
    # in-kernel and XLA transcendental implementations at args up to ~128*pi.
    np.testing.assert_allclose(np.asarray(out), np.asarray(ref),
                               rtol=0.0, atol=5e-4)

    # Exercise the multi-block grid + ragged (masked) last block, no padding.
    pos_b = jax.random.uniform(k3, (3, 130, 3), jnp.float32, minval=-1.0, maxval=1.0)
    rays_b = jax.random.normal(k4, (3, 130, 3), jnp.float32)
    rays_b = rays_b / jnp.linalg.norm(rays_b, axis=-1, keepdims=True)
    out_b = jax.block_until_ready(ray_pos_encoder(pos_b, rays_b, tm_cap=128))
    ref_b = jax.block_until_ready(_reference(pos_b, rays_b))
    np.testing.assert_allclose(np.asarray(out_b), np.asarray(ref_b),
                               rtol=0.0, atol=5e-4)

    # bf16-output path (halves HBM write traffic on the mem-bound generations).
    out_bf = jax.block_until_ready(
        ray_pos_encoder(pos_b, rays_b, out_dtype=jnp.bfloat16))
    np.testing.assert_allclose(np.asarray(out_bf).astype(np.float32),
                               np.asarray(ref_b), rtol=0.0, atol=2e-2)

    print("KERNEL_OK")
</pallas_src>

<mosaic_0001>
module attributes {stable_mosaic.version = 11 : i64} {
  func.func @_raypos_kernel(%arg0: i32, %arg1: memref<12x1xf32, #tpu.memory_space<vmem>>, %arg2: memref<6x128xf32, #tpu.memory_space<vmem>>, %arg3: memref<128x72xf32, #tpu.memory_space<vmem>>) attributes {dimension_semantics = [#tpu.dimension_semantics<parallel>], iteration_bounds = array<i64: 1>, scalar_prefetch = 0 : i64, scratch_operands = 0 : i64, tpu.core_type = #tpu.core_type<tc>, window_params = [{pipeline_mode = #tpu.pipeline_mode<synchronous>, transform_indices = @transform_0, window_bounds = array<i64: 12, 1>}, {transform_indices = @transform_1, window_bounds = array<i64: 6, 128>}, {transform_indices = @transform_2, window_bounds = array<i64: 128, 72>}]} {
    %c0 = arith.constant 0 : index
    %c0_0 = arith.constant 0 : index
    %0 = vector.load %arg1[%c0, %c0_0] : memref<12x1xf32, #tpu.memory_space<vmem>>, vector<8x1xf32>
    %c8 = arith.constant 8 : index
    %c0_1 = arith.constant 0 : index
    %1 = vector.load %arg1[%c8, %c0_1] : memref<12x1xf32, #tpu.memory_space<vmem>>, vector<4x1xf32>
    %c0_2 = arith.constant 0 : index
    %c0_3 = arith.constant 0 : index
    %2 = vector.load %arg2[%c0_2, %c0_3] : memref<6x128xf32, #tpu.memory_space<vmem>>, vector<1x128xf32>
    %3 = vector.broadcast %0 : vector<8x1xf32> to vector<8x128xf32>
    %4 = vector.broadcast %2 : vector<1x128xf32> to vector<8x128xf32>
    %5 = arith.mulf %3, %4 : vector<8x128xf32>
    %c1 = arith.constant 1 : index
    %c0_4 = arith.constant 0 : index
    %6 = vector.load %arg2[%c1, %c0_4] : memref<6x128xf32, #tpu.memory_space<vmem>>, vector<1x128xf32>
    %7 = vector.broadcast %0 : vector<8x1xf32> to vector<8x128xf32>
    %8 = vector.broadcast %6 : vector<1x128xf32> to vector<8x128xf32>
    %9 = arith.mulf %7, %8 : vector<8x128xf32>
    %c2 = arith.constant 2 : index
    %c0_5 = arith.constant 0 : index
    %10 = vector.load %arg2[%c2, %c0_5] : memref<6x128xf32, #tpu.memory_space<vmem>>, vector<1x128xf32>
    %11 = vector.broadcast %0 : vector<8x1xf32> to vector<8x128xf32>
    %12 = vector.broadcast %10 : vector<1x128xf32> to vector<8x128xf32>
    %13 = arith.mulf %11, %12 : vector<8x128xf32>
    %14 = tpu.concatenate %5, %9, %13 in 0 : vector<8x128xf32>, vector<8x128xf32>, vector<8x128xf32> -> vector<24x128xf32>
    %c3 = arith.constant 3 : index
    %c0_6 = arith.constant 0 : index
    %15 = vector.load %arg2[%c3, %c0_6] : memref<6x128xf32, #tpu.memory_space<vmem>>, vector<1x128xf32>
    %16 = vector.broadcast %1 : vector<4x1xf32> to vector<4x128xf32>
    %17 = vector.broadcast %15 : vector<1x128xf32> to vector<4x128xf32>
    %18 = arith.mulf %16, %17 : vector<4x128xf32>
    %c4 = arith.constant 4 : index
    %c0_7 = arith.constant 0 : index
    %19 = vector.load %arg2[%c4, %c0_7] : memref<6x128xf32, #tpu.memory_space<vmem>>, vector<1x128xf32>
    %20 = vector.broadcast %1 : vector<4x1xf32> to vector<4x128xf32>
    %21 = vector.broadcast %19 : vector<1x128xf32> to vector<4x128xf32>
    %22 = arith.mulf %20, %21 : vector<4x128xf32>
    %c5 = arith.constant 5 : index
    %c0_8 = arith.constant 0 : index
    %23 = vector.load %arg2[%c5, %c0_8] : memref<6x128xf32, #tpu.memory_space<vmem>>, vector<1x128xf32>
    %24 = vector.broadcast %1 : vector<4x1xf32> to vector<4x128xf32>
    %25 = vector.broadcast %23 : vector<1x128xf32> to vector<4x128xf32>
    %26 = arith.mulf %24, %25 : vector<4x128xf32>
    %27 = tpu.concatenate %18, %22, %26 in 0 : vector<4x128xf32>, vector<4x128xf32>, vector<4x128xf32> -> vector<12x128xf32>
    %28 = math.sin %14 : vector<24x128xf32>
    %29 = math.cos %14 : vector<24x128xf32>
    %30 = math.sin %27 : vector<12x128xf32>
    %31 = math.cos %27 : vector<12x128xf32>
    %32 = tpu.concatenate %28, %29, %30, %31 in 0 : vector<24x128xf32>, vector<24x128xf32>, vector<12x128xf32>, vector<12x128xf32> -> vector<72x128xf32>
    %33 = tpu.transpose %32, [1, 0] : vector<72x128xf32> -> vector<128x72xf32>
    %c0_9 = arith.constant 0 : index
    %c0_10 = arith.constant 0 : index
    %34 = vector.load %arg3[%c0_9, %c0_10] : memref<128x72xf32, #tpu.memory_space<vmem>>, vector<128x72xf32>
    tpu.vector_store %arg3[%c0_9, %c0_10], %33 {strides = array<i32>} : memref<128x72xf32, #tpu.memory_space<vmem>>, vector<128x72xf32>,
    return
  }
  func.func @transform_0(%arg0: i32) -> (i32, i32) {
    %c0_i32 = arith.constant 0 : i32
    %c0_i32_0 = arith.constant 0 : i32
    %c0_i32_1 = arith.constant 0 : i32
    return %c0_i32, %c0_i32_0 : i32, i32
  }
  func.func @transform_1(%arg0: i32) -> (i32, i32) {
    %c0_i32 = arith.constant 0 : i32
    %c0_i32_0 = arith.constant 0 : i32
    return %c0_i32, %arg0 : i32, i32
  }
  func.func @transform_2(%arg0: i32) -> (i32, i32) {
    %c0_i32 = arith.constant 0 : i32
    %c0_i32_0 = arith.constant 0 : i32
    return %arg0, %c0_i32 : i32, i32
  }
}

</mosaic_0001>

<bundles_post_ra>
// kernel: ray_pos_encoder.1
= control target key start
LH: loop header
LB: loop body
LE: loop exit
PB: predicated region body
PF: predicated region fallthrough
CT: control target
= control target key end

     0   :  { %v1295_v1 = vmov 0   ;;  %s1880_s0 = inlined_call_operand.vmem [shape: f32[12,1], index: 0, kind: input, shape index: {}]   ;;  %s1881_s1 = inlined_call_operand.vmem [shape: f32[6,32], index: 1, kind: input, shape index: {}]   ;;  %s1882_s2 = inlined_call_operand.hbm [shape: f32[32,72], index: 2, kind: output, shape index: {}]  }
   0x1   :  { %v12_v0 = vld [vmem:[%s1880_s0] sm:$0xff]  ;;  %1250 = vset.pattern.permute.xlu0 %v1295_v1 }
   0x2   :  { %7 = vsyncpa [#allocation3], 0  ;;  %17 = vperm.xlu0 %1250, %v12_v0   ;;  %v13_v2 = vld [vmem:[%s1880_s0 + $0x8] sm:$0xf]  ;;  %v1173_v3 = vld [vmem:[%s1881_s1] ss:$0 sm:$0xff] }
   0x3   :  { %v1174_v6 = vld [vmem:[%s1881_s1 + $0x1] ss:$0 sm:$0xff]  ;;  %v1177_v8 = vld [vmem:[%s1881_s1 + $0x4] ss:$0 sm:$0xff]  ;;  %v1178_v9 = vld [vmem:[%s1881_s1 + $0x5] ss:$0 sm:$0xff] }
   0x4   :  { %v1176_v13 = vld [vmem:[%s1881_s1 + $0x3] ss:$0 sm:$0xff]  ;;  %vm63_vm0 = vcmask 1043456   ;;  %v1175_v22 = vld [vmem:[%s1881_s1 + $0x2] ss:$0 sm:$0xff] }
   0x5   :  { %v1296_v47 = vmov 2475754826   ;;  %v1297_v52 = vmov 2131351028   ;;  %v1298_v56 = vmov 683565275  }
   0x6   :  { %40 = vperm.xlu0 %1250, %v13_v2  }
  0x81   :  { %v18_v4 = vpop.permute.xlu0 %17 }
  0x82   :  { %v1329_v5 = vmul.f32 %v1173_v3, %v18_v4  ;;  %v1341_v11 = vmul.f32 %v1174_v6, %v18_v4  ;;  %v1358_v28 = vmul.f32 %v1175_v22, %v18_v4  ;;  %v1299_v6 = vmov 2102212464  }
  0x84   :  { %v68_v7 = vand.u32 2139095040, %v1329_v5  ;;  %v172_v21 = vand.u32 2139095040, %v1341_v11  ;;  %v65_v32 = vand.u32 2147483647, %v1329_v5  ;;  %v276_v39 = vand.u32 2139095040, %v1358_v28 }
  0x85   :  { %v41_v10 = vpop.permute.xlu0 %40 }
  0x86   :  { %v69_v12 = vshrl.u32 %v68_v7, 23  ;;  %v53_v14 = vmul.f32 %v1177_v8, %v41_v10  ;;  %v1346_v15 = vmul.f32 %v1178_v9, %v41_v10  ;;  %v47_v17 = vmul.f32 %v1176_v13, %v41_v10 }
  0x87   :  { %v173_v30 = vshrl.u32 %v172_v21, 23  ;;  %v1374_v42 = vand.u32 8388607, %v65_v32  ;;  %v1380_v50 = vshrl.u32 %v276_v39, 23 }
  0x88   :  { %v1179_v16 = vadd.s32 4294967169, %v69_v12  ;;  %v61_v18 = vrot.slane %v53_v14, 4  ;;  %v793_v19 = vand.u32 2139095040, %v1346_v15  ;;  %v790_v24 = vand.u32 2147483647, %v1346_v15 }
  0x89   :  { %v1183_v38 = vadd.s32 4294967169, %v173_v30  ;;  %v73_v55 = vor.u32 8388608, %v1374_v42 }
  0x8a   :  { %v75_v20 = vadd.s32 1, %v1179_v16  ;;  %v1354_v23 = vsel %vm63_vm0, %v47_v17, %v61_v18  ;;  %v794_v25 = vshrl.u32 %v793_v19, 23  ;;  %v797_v34 = vand.u32 8388607, %v790_v24 }
  0x8b   :  { %v686_v27 = vand.u32 2147483647, %v1354_v23  ;;  %v689_v31 = vand.u32 2139095040, %v1354_v23  ;;  %v1378_v49 = vadd.s32 1, %v1183_v38 }
  0x8c   :  { %vm76_vm1 = vcmp.gt.s32.totalorder %v75_v20, 0  ;;  %v1207_v33 = vadd.s32 4294967169, %v794_v25  ;;  %v798_v43 = vor.u32 8388608, %v797_v34  ;;  %v1300_v25 = vmov 920167782  }
  0x8d   :  { %v77_v26 = vsel %vm76_vm1, %v75_v20, 0  ;;  %v690_v36 = vshrl.u32 %v689_v31, 23  ;;  %v693_v37 = vand.u32 8388607, %v686_v27  ;;  %v1301_v31 = vmov 1326507024  }
  0x8e   :  { %v1360_v29 = vand.u32 31, %v77_v26  ;;  %v800_v40 = vadd.s32 1, %v1207_v33  ;;  %v1386_v54 = vshrl.u32 %v77_v26, 5  ;;  %v1394_v60 = vshll.u32 %v798_v43, 8 }
  0x8f   :  { %v1203_v41 = vadd.s32 4294967169, %v690_v36  ;;  %v694_v44 = vor.u32 8388608, %v693_v37  ;;  %vm180_vm12 = vcmp.gt.s32.totalorder %v1378_v49, 0 }
  0x90   :  { %v1367_v35 = vsub.s32 32, %v1360_v29  ;;  %vm801_vm2 = vcmp.gt.s32.totalorder %v800_v40, 0  ;;  %v82_v57 = vshll.u32 %v1298_v56, %v1360_v29  ;;  %v85_v61 = vshll.u32 %v1296_v47, %v1360_v29 }
  0x91   :  { %v696_v45 = vadd.s32 1, %v1203_v41  ;;  %v802_v46 = vsel %vm801_vm2, %v800_v40, 0  ;;  %v1398_v63 = vshll.u32 %v694_v44, 8  ;;  %v1404_v1 = vshll.u32 %v1297_v52, %v1360_v29 }
  0x92   :  { %v83_v48 = vshrl.u32 %v1296_v47, %v1367_v35  ;;  %v1382_v51 = vand.u32 31, %v802_v46  ;;  %v86_v53 = vshrl.u32 %v1297_v52, %v1367_v35  ;;  %v1406_v2 = vshrl.u32 %v802_v46, 5 }
  0x93   :  { %vm697_vm3 = vcmp.gt.s32.totalorder %v696_v45, 0  ;;  %v1414_v7 = vshrl.u32 %v1299_v6, %v1367_v35  ;;  %vm97_vm14 = vcmp.lt.s32.totalorder %v1386_v54, 1  ;;  %vm100_vm15 = vcmp.lt.s32.totalorder %v1386_v54, 4 }
  0x94   :  { %v698_v58 = vsel %vm697_vm3, %v696_v45, 0  ;;  %v1392_v59 = vsub.s32 32, %v1382_v51  ;;  %v1400_v0 = vor.u32 %v83_v48, %v82_v57  ;;  %v807_v3 = vshll.u32 %v1298_v56, %v1382_v51 }
  0x95   :  { %v700_v62 = vand.u32 31, %v698_v58  ;;  %v1410_v4 = vor.u32 %v86_v53, %v85_v61  ;;  %v1416_v8 = vshrl.u32 %v698_v58, 5  ;;  %v810_v10 = vshll.u32 %v1296_v47, %v1382_v51 }
  0x96   :  { %v813_v12 = vshll.u32 %v1297_v52, %v1382_v51  ;;  %v808_v16 = vshrl.u32 %v1296_v47, %v1392_v59  ;;  %v816_v17 = vshll.u32 %v1299_v6, %v1382_v51  ;;  %v811_v38 = vshrl.u32 %v1297_v52, %v1392_v59 }
  0x97   :  { %v701_v9 = vsub.s32 32, %v700_v62  ;;  %v703_v13 = vshll.u32 %v1298_v56, %v700_v62  ;;  %v706_v14 = vshll.u32 %v1296_v47, %v700_v62  ;;  %v709_v20 = vshll.u32 %v1297_v52, %v700_v62 }
  0x98   :  { %v712_v22 = vshll.u32 %v1299_v6, %v700_v62  ;;  %v715_v30 = vshll.u32 %v1300_v25, %v700_v62  ;;  %vm718_vm4 = vcmp.lt.s32.totalorder %v1416_v8, 1  ;;  %v814_v41 = vshrl.u32 %v1299_v6, %v1392_v59 }
  0x99   :  { %v704_v18 = vshrl.u32 %v1296_v47, %v701_v9  ;;  %v707_v19 = vshrl.u32 %v1297_v52, %v701_v9  ;;  %v710_v21 = vshrl.u32 %v1299_v6, %v701_v9  ;;  %v713_v26 = vshrl.u32 %v1300_v25, %v701_v9 }
  0x9a   :  { %v716_v33 = vshrl.u32 %v1301_v31, %v701_v9  ;;  %vm719_vm5 = vcmp.lt.s32.totalorder %v1416_v8, 2  ;;  %vm721_vm6 = vcmp.lt.s32.totalorder %v1416_v8, 4  ;;  %vm720_vm7 = vcmp.lt.s32.totalorder %v1416_v8, 3 }
  0x9b   :  { %v705_v34 = vor.u32 %v704_v18, %v703_v13  ;;  %v708_v36 = vor.u32 %v707_v19, %v706_v14  ;;  %v711_v37 = vor.u32 %v710_v21, %v709_v20  ;;  %v714_v39 = vor.u32 %v713_v26, %v712_v22 }
  0x9c   :  { %v717_v40 = vor.u32 %v716_v33, %v715_v30  ;;  %v817_v48 = vshrl.u32 %v1300_v25, %v1392_v59  ;;  %v1458_v58 = vor.u32 %v808_v16, %v807_v3  ;;  %v1460_v61 = vor.u32 %v811_v38, %v810_v10 }
  0x9d   :  { %v726_v43 = vsel %vm718_vm4, %v705_v34, %v708_v36  ;;  %v730_v44 = vsel %vm718_vm4, %v708_v36, %v711_v37  ;;  %v727_v45 = vsel %vm721_vm6, %v714_v39, 920167782  ;;  %v815_v14 = vor.u32 %v814_v41, %v813_v12 }
  0x9e   :  { %v731_v46 = vsel %vm721_vm6, %v717_v40, 1326507024  ;;  %v728_v53 = vsel %vm720_vm7, %v711_v37, %v727_v45  ;;  %v818_v18 = vor.u32 %v817_v48, %v816_v17  ;;  %v819_v3 = vshll.u32 %v1300_v25, %v1382_v51 }
  0x9f   :  { %v732_v57 = vsel %vm720_vm7, %v714_v39, %v731_v46  ;;  %v729_v62 = vsel %vm719_vm5, %v726_v43, %v728_v53  ;;  %v820_v10 = vshrl.u32 %v1301_v31, %v1392_v59  ;;  %v92_v16 = vshrl.u32 %v1300_v25, %v1367_v35 }
  0xa0   :  { %v733_v13 = vsel %vm719_vm5, %v730_v44, %v732_v57  ;;  %v1471_v21 = vmul.u32.u64.low %v1398_v63, %v729_v62  ;;  %v1472_v22 = vmul.u32.u64.high %v1398_v63, %v729_v62, %v1471_v21  ;;  %v95_v12 = vshrl.u32 %v1301_v31, %v1367_v35 }
  0xa1   :  { %v1467_v19 = vmul.u32.u64.low %v1398_v63, %v733_v13  ;;  %v1468_v20 = vmul.u32.u64.high %v1398_v63, %v733_v13, %v1467_v19  ;;  %v702_v17 = vshrl.u32 %v1298_v56, %v701_v9  ;;  %v723_v26 = vsel %vm721_vm6, %v711_v37, 2102212464 }
  0xa2   :  { %vm822_vm8 = vcmp.lt.s32.totalorder %v1406_v2, 1  ;;  %vm825_vm9 = vcmp.lt.s32.totalorder %v1406_v2, 4  ;;  %v821_v30 = vor.u32 %v820_v10, %v819_v3  ;;  %v91_v38 = vshll.u32 %v1299_v6, %v1360_v29 }
  0xa3   :  { %v830_v51 = vsel %vm822_vm8, %v1458_v58, %v1460_v61  ;;  %v831_v33 = vsel %vm825_vm9, %v818_v18, 920167782  ;;  %v722_v9 = vsel %vm718_vm4, %v702_v17, %v705_v34  ;;  %vm824_vm10 = vcmp.lt.s32.totalorder %v1406_v2, 3 }
  0xa4   :  { %v834_v37 = vsel %vm822_vm8, %v1460_v61, %v815_v14  ;;  %v94_v39 = vshll.u32 %v1300_v25, %v1360_v29  ;;  %v724_v40 = vsel %vm720_vm7, %v708_v36, %v723_v26  ;;  %vm823_vm11 = vcmp.lt.s32.totalorder %v1406_v2, 2 }
  0xa5   :  { %v832_v41 = vsel %vm824_vm10, %v815_v14, %v831_v33  ;;  %v835_v34 = vsel %vm825_vm9, %v821_v30, 1326507024  ;;  %v93_v45 = vor.u32 %v92_v16, %v91_v38  ;;  %v744_v29 = vadd.s32 1, %v1472_v22 }
  0xa6   :  { %v833_v43 = vsel %vm823_vm11, %v830_v51, %v832_v41  ;;  %v836_v44 = vsel %vm824_vm10, %v818_v18, %v835_v34  ;;  %v96_v46 = vor.u32 %v95_v12, %v94_v39  ;;  %v90_v48 = vor.u32 %v1414_v7, %v1404_v1 }
  0xa7   :  { %v837_v36 = vsel %vm823_vm11, %v834_v37, %v836_v44  ;;  %vm743_vm13 = vc.u32 %v1468_v20, %v1471_v21  ;;  %v1524_v53 = vmul.u32.u64.low %v1394_v60, %v833_v43  ;;  %v1525_v57 = vmul.u32.u64.high %v1394_v60, %v833_v43, %v1524_v53 }
  0xa8   :  { %v725_v62 = vsel %vm719_vm5, %v722_v9, %v724_v40  ;;  %v1532_v13 = vmul.u32.u64.low %v1394_v60, %v837_v36  ;;  %v1533_v18 = vmul.u32.u64.high %v1394_v60, %v837_v36, %v1532_v13  ;;  %vm99_vm1 = vcmp.lt.s32.totalorder %v1386_v54, 3 }
  0xa9   :  { %v105_v1 = vsel %vm97_vm14, %v1400_v0, %v1410_v4  ;;  %v106_v7 = vsel %vm100_vm15, %v93_v45, 920167782  ;;  %v110_v19 = vsel %vm100_vm15, %v96_v46, 1326507024  ;;  %v181_v3 = vsel %vm180_vm12, %v1378_v49, 0 }
  0xaa   :  { %v745_v8 = vsel %vm743_vm13, %v744_v29, %v1472_v22  ;;  %v107_v10 = vsel %vm99_vm1, %v90_v48, %v106_v7  ;;  %v109_v16 = vsel %vm97_vm14, %v1410_v4, %v90_v48  ;;  %v741_v12 = vmul.u32 %v1398_v63, %v725_v62 }
  0xab   :  { %v81_v17 = vshrl.u32 %v1298_v56, %v1367_v35  ;;  %vm98_vm2 = vcmp.lt.s32.totalorder %v1386_v54, 2  ;;  %v102_v26 = vsel %vm100_vm15, %v90_v48, 2102212464  ;;  %v827_v49 = vsel %vm825_vm9, %v815_v14, 2102212464 }
  0xac   :  { %v108_v22 = vsel %vm98_vm2, %v105_v1, %v107_v10  ;;  %v111_v30 = vsel %vm99_vm1, %v93_v45, %v110_v19  ;;  %v113_v51 = vshll.u32 %v73_v55, 8  ;;  %v183_v33 = vand.u32 31, %v181_v3 }
  0xad   :  { %v746_v63 = vadd.s32 %v745_v8, %v741_v12  ;;  %v806_v35 = vshrl.u32 %v1298_v56, %v1392_v59  ;;  %v112_v38 = vsel %vm98_vm2, %v109_v16, %v111_v30  ;;  %v101_v14 = vsel %vm97_vm14, %v81_v17, %v1400_v0 }
  0xae   :  { %v103_v9 = vsel %vm99_vm1, %v1410_v4, %v102_v26  ;;  %v1570_v37 = vmul.u32.u64.low %v113_v51, %v112_v38  ;;  %v1571_v39 = vmul.u32.u64.high %v113_v51, %v112_v38, %v1570_v37  ;;  %v828_v55 = vsel %vm824_vm10, %v1460_v61, %v827_v49 }
  0xaf   :  { %v826_v42 = vsel %vm822_vm8, %v806_v35, %v1458_v58  ;;  %v1579_v59 = vmul.u32.u64.low %v113_v51, %v108_v22  ;;  %v1580_v40 = vmul.u32.u64.high %v113_v51, %v108_v22, %v1579_v59  ;;  %v848_v0 = vadd.s32 1, %v1525_v57 }
  0xb0   :  { %v1584_v41 = vsub.s32 32, %v183_v33  ;;  %vm847_vm3 = vc.u32 %v1533_v18, %v1524_v53  ;;  %v104_v4 = vsel %vm98_vm2, %v101_v14, %v103_v9  ;;  %v1187_v58 = vadd.s32 4294967169, %v1380_v50 }
  0xb1   :  { %v747_v34 = vadd.s32 536870912, %v746_v63  ;;  %v829_v61 = vsel %vm823_vm11, %v826_v42, %v828_v55  ;;  %vm122_vm4 = vc.u32 %v1571_v39, %v1579_v59  ;;  %v123_v43 = vadd.s32 1, %v1580_v40 }
  0xb2   :  { %v849_v44 = vsel %vm847_vm3, %v848_v0, %v1525_v57  ;;  %v120_v45 = vmul.u32 %v113_v51, %v104_v4  ;;  %v169_v46 = vand.u32 2147483647, %v1341_v11  ;;  %v845_v29 = vmul.u32 %v1394_v60, %v829_v61 }
  0xb3   :  { %v124_v54 = vsel %vm122_vm4, %v123_v43, %v1580_v40  ;;  %v199_v50 = vshrl.u32 %v1301_v31, %v1584_v41  ;;  %v283_v36 = vadd.s32 1, %v1187_v58  ;;  %v1602_v2 = vshrl.u32 %v747_v34, 30 }
  0xb4   :  { %v125_v48 = vadd.s32 %v124_v54, %v120_v45  ;;  %v196_v62 = vshrl.u32 %v1300_v25, %v1584_v41  ;;  %v850_v13 = vadd.s32 %v849_v44, %v845_v29  ;;  %v190_v57 = vshrl.u32 %v1297_v52, %v1584_v41 }
  0xb5   :  { %v193_v1 = vshrl.u32 %v1299_v6, %v1584_v41  ;;  %v198_v60 = vshll.u32 %v1300_v25, %v183_v33  ;;  %v182_v7 = vshrl.u32 %v181_v3, 5  ;;  %v176_v8 = vand.u32 8388607, %v169_v46 }
  0xb6   :  { %v126_v19 = vadd.s32 536870912, %v125_v48  ;;  %v195_v10 = vshll.u32 %v1299_v6, %v183_v33  ;;  %v187_v16 = vshrl.u32 %v1296_v47, %v1584_v41  ;;  %v189_v12 = vshll.u32 %v1296_v47, %v183_v33 }
  0xb7   :  { %v192_v17 = vshll.u32 %v1297_v52, %v183_v33  ;;  %v200_v26 = vor.u32 %v199_v50, %v198_v60  ;;  %v749_v49 = vshll.u32 %v1602_v2, 30  ;;  %v851_v3 = vadd.s32 536870912, %v850_v13 }
  0xb8   :  { %v1619_v22 = vshrl.u32 %v126_v19, 30  ;;  %v197_v30 = vor.u32 %v196_v62, %v195_v10  ;;  %v186_v51 = vshll.u32 %v1298_v56, %v183_v33  ;;  %v191_v35 = vor.u32 %v190_v57, %v189_v12 }
  0xb9   :  { %v194_v38 = vor.u32 %v193_v1, %v192_v17  ;;  %vm204_vm5 = vcmp.lt.s32.totalorder %v182_v7, 4  ;;  %vm284_vm6 = vcmp.gt.s32.totalorder %v283_v36, 0  ;;  %v177_v9 = vor.u32 8388608, %v176_v8 }
  0xba   :  { %v128_v14 = vshll.u32 %v1619_v22, 30  ;;  %v188_v37 = vor.u32 %v187_v16, %v186_v51  ;;  %v214_v42 = vsel %vm204_vm5, %v200_v26, 1326507024  ;;  %vm201_vm7 = vcmp.lt.s32.totalorder %v182_v7, 1 }
  0xbb   :  { %vm203_vm8 = vcmp.lt.s32.totalorder %v182_v7, 3  ;;  %v210_v40 = vsel %vm204_vm5, %v197_v30, 920167782  ;;  %v1625_v0 = vsub.s32 %v746_v63, %v749_v49  ;;  %v1627_v4 = vshrl.u32 %v851_v3, 30 }
  0xbc   :  { %v129_v55 = vsub.s32 %v125_v48, %v128_v14  ;;  %v213_v33 = vsel %vm201_vm7, %v191_v35, %v194_v38  ;;  %v215_v58 = vsel %vm203_vm8, %v197_v30, %v214_v42  ;;  %v285_v34 = vsel %vm284_vm6, %v283_v36, 0 }
  0xbd   :  { %vm202_vm9 = vcmp.lt.s32.totalorder %v182_v7, 2  ;;  %v209_v43 = vsel %vm201_vm7, %v188_v37, %v191_v35  ;;  %v211_v44 = vsel %vm203_vm8, %v194_v38, %v210_v40  ;;  %v206_v29 = vsel %vm204_vm5, %v194_v38, 2102212464 }
  0xbe   :  { %v131_v61 = vsub.s32 0, %v129_v55  ;;  %v216_v54 = vsel %vm202_vm9, %v213_v33, %v215_v58  ;;  %v217_v63 = vshll.u32 %v177_v9, 8  ;;  %v287_v50 = vand.u32 31, %v285_v34 }
  0xbf   :  { %v752_v48 = vsub.s32 0, %v1625_v0  ;;  %v853_v62 = vshll.u32 %v1627_v4, 30  ;;  %v185_v36 = vshrl.u32 %v1298_v56, %v1584_v41  ;;  %v212_v1 = vsel %vm202_vm9, %v209_v43, %v211_v44 }
  0xc0   :  { %v1180_v45 = vmin.u32 %v131_v61, %v129_v55  ;;  %v1640_v60 = vmul.u32.u64.low %v217_v63, %v216_v54  ;;  %v1641_v19 = vmul.u32.u64.high %v217_v63, %v216_v54, %v1640_v60  ;;  %v207_v10 = vsel %vm203_vm8, %v191_v35, %v206_v29 }
  0xc1   :  { %v205_v8 = vsel %vm201_vm7, %v185_v36, %v188_v37  ;;  %v1646_v12 = vmin.u32 %v752_v48, %v1625_v0  ;;  %v1648_v17 = vsub.s32 %v850_v13, %v853_v62  ;;  %v288_v41 = vsub.s32 32, %v287_v50 }
  0xc2   :  { %v133_v57 = vclz %v1180_v45  ;;  %v1650_v26 = vmul.u32.u64.low %v217_v63, %v212_v1  ;;  %v1651_v49 = vmul.u32.u64.high %v217_v63, %v212_v1, %v1650_v26  ;;  %v208_v30 = vsel %vm202_vm9, %v205_v8, %v207_v10 }
  0xc3   :  { %v1655_v3 = vshrl.u32 %v285_v34, 5  ;;  %v121_v51 = vadd.s32 %v1579_v59, %v1571_v39  ;;  %vm67_vm11 = vcmp.lt.s32.totalorder %v1329_v5, 0  ;;  %v273_v13 = vand.u32 2147483647, %v1358_v28 }
  0xc4   :  { %v1181_v16 = vadd.s32 4294967294, %v133_v57  ;;  %vm226_vm12 = vc.u32 %v1641_v19, %v1650_v26  ;;  %v754_v9 = vclz %v1646_v12  ;;  %v856_v7 = vsub.s32 0, %v1648_v17 }
  0xc5   :  { %v224_v37 = vmul.u32 %v217_v63, %v208_v30  ;;  %v227_v42 = vadd.s32 1, %v1651_v49  ;;  %v291_v59 = vshrl.u32 %v1296_v47, %v288_v41  ;;  %v151_v58 = vsub.s32 4, %v1619_v22 }
  0xc6   :  { %vm1182_vm10 = vcmp.lt.s32.totalorder %v1181_v16, 0  ;;  %v290_v61 = vshll.u32 %v1298_v56, %v287_v50  ;;  %v294_v43 = vshrl.u32 %v1297_v52, %v288_v41  ;;  %v280_v54 = vand.u32 8388607, %v273_v13 }
  0xc7   :  { %v136_v35 = vsel %vm1182_vm10, 0, %v1181_v16  ;;  %v228_v34 = vsel %vm226_vm12, %v227_v42, %v1651_v49  ;;  %v296_v48 = vshll.u32 %v1297_v52, %v287_v50  ;;  %v297_v62 = vshrl.u32 %v1299_v6, %v288_v41 }
  0xc8   :  { %v137_v38 = vsub.s32 32, %v136_v35  ;;  %v141_v14 = vsub.s32 4294967266, %v136_v35  ;;  %v138_v40 = vshll.u32 %v129_v55, %v136_v35  ;;  %v229_v29 = vadd.s32 %v228_v34, %v224_v37 }
  0xc9   :  { %v292_v63 = vor.u32 %v291_v59, %v290_v61  ;;  %v293_v55 = vshll.u32 %v1296_v47, %v287_v50  ;;  %vm1678_vm13 = vcmp.le.f32.partialorder %v65_v32, 0.7853982  ;;  %v299_v60 = vshll.u32 %v1299_v6, %v287_v50 }
  0xca   :  { %v139_v33 = vshrl.u32 %v121_v51, %v137_v38  ;;  %v142_v39 = vadd.s32 127, %v141_v14  ;;  %v230_v1 = vadd.s32 536870912, %v229_v29  ;;  %v300_v8 = vshrl.u32 %v1300_v25, %v288_v41 }
  0xcb   :  { %v295_v10 = vor.u32 %v294_v43, %v293_v55  ;;  %v298_v16 = vor.u32 %v297_v62, %v296_v48  ;;  %v302_v47 = vshll.u32 %v1300_v25, %v287_v50  ;;  %v303_v52 = vshrl.u32 %v1301_v31, %v288_v41 }
  0xcc   :  { %v140_v44 = vor.u32 %v139_v33, %v138_v40  ;;  %v143_v45 = vshll.u32 %v142_v39, 23  ;;  %v1686_v30 = vshrl.u32 %v230_v1, 30  ;;  %v301_v32 = vor.u32 %v300_v8, %v299_v60 }
  0xcd   :  { %v152_v51 = vsel %vm67_vm11, %v151_v58, %v1619_v22  ;;  %v281_v35 = vor.u32 8388608, %v280_v54  ;;  %v289_v6 = vshrl.u32 %v1298_v56, %v288_v41  ;;  %v304_v38 = vor.u32 %v303_v52, %v302_v47 }
  0xce   :  { %v144_v57 = vor.u32 4788187, %v143_v45  ;;  %v147_v49 = vcvt.s32.f32 %v140_v44  ;;  %v232_v37 = vshll.u32 %v1686_v30, 30  ;;  %vm305_vm14 = vcmp.lt.s32.totalorder %v1655_v3, 1 }
  0xcf   :  { %vm308_vm15 = vcmp.lt.s32.totalorder %v1655_v3, 4  ;;  %vm306_vm1 = vcmp.lt.s32.totalorder %v1655_v3, 2  ;;  %v313_v31 = vsel %vm305_vm14, %v292_v63, %v295_v10  ;;  %vm307_vm2 = vcmp.lt.s32.totalorder %v1655_v3, 3 }
  0xd0   :  { %v145_v12 = vand.u32 2147483647, %v144_v57  ;;  %v310_v25 = vsel %vm308_vm15, %v298_v16, 2102212464  ;;  %v314_v50 = vsel %vm308_vm15, %v301_v32, 920167782  ;;  %v233_v40 = vsub.s32 %v229_v29, %v232_v37 }
  0xd1   :  { %v309_v22 = vsel %vm305_vm14, %v289_v6, %v292_v63  ;;  %v315_v33 = vsel %vm307_vm2, %v298_v16, %v314_v50  ;;  %v317_v56 = vsel %vm305_vm14, %v295_v10, %v298_v16  ;;  %v318_v41 = vsel %vm308_vm15, %v304_v38, 1326507024 }
  0xd2   :  { %v148_v14 = vmul.f32 %v147_v49, %v145_v12  ;;  %v321_v39 = vshll.u32 %v281_v35, 8  ;;  %v235_v58 = vsub.s32 0, %v233_v40  ;;  %v311_v34 = vsel %vm307_vm2, %v295_v10, %v310_v25 }
  0xd3   :  { %v316_v61 = vsel %vm306_vm1, %v313_v31, %v315_v33  ;;  %v319_v44 = vsel %vm307_vm2, %v301_v32, %v318_v41  ;;  %v1205_v54 = vadd.s32 4294967294, %v754_v9  ;;  %v1712_v48 = vsel %vm1678_vm13, 0, %v152_v51 }
  0xd4   :  { %v149_v42 = vxor.u32 2147483648, %v148_v14  ;;  %v1704_v45 = vmul.u32.u64.low %v321_v39, %v316_v61  ;;  %v1705_v29 = vmul.u32.u64.high %v321_v39, %v316_v61, %v1704_v45  ;;  %v1184_v63 = vmin.u32 %v235_v58, %v233_v40 }
  0xd5   :  { %v320_v55 = vsel %vm306_vm1, %v317_v56, %v319_v44  ;;  %v1208_v1 = vmin.u32 %v856_v7, %v1648_v17  ;;  %v312_v9 = vsel %vm306_vm1, %v309_v22, %v311_v34  ;;  %vm1206_vm3 = vcmp.lt.s32.totalorder %v1205_v54, 0 }
  0xd6   :  { %v150_v59 = vsel %vm67_vm11, %v149_v42, %v148_v14  ;;  %v1714_v62 = vmul.u32.u64.low %v321_v39, %v320_v55  ;;  %v1715_v57 = vmul.u32.u64.high %v321_v39, %v320_v55, %v1714_v62  ;;  %v237_v60 = vclz %v1184_v63 }
  0xd7   :  { %v153_v43 = vsel %vm1678_vm13, %v1329_v5, %v150_v59  ;;  %v331_v8 = vadd.s32 1, %v1705_v29  ;;  %v158_v10 = vadd.s32 3, %v1712_v48  ;;  %v328_v16 = vmul.u32 %v321_v39, %v312_v9 }
  0xd8   :  { %1251 = vcosq.f32 %v153_v43  ;;  %v1185_v36 = vadd.s32 4294967294, %v237_v60  ;;  %vm330_vm4 = vc.u32 %v1715_v57, %v1704_v45  ;;  %v858_v47 = vclz %v1208_v1 }
  0xd9   :  { %1253 = vsinq.f32 %v153_v43  ;;  %v332_v52 = vsel %vm330_vm4, %v331_v8, %v1705_v29  ;;  %v757_v12 = vsel %vm1206_vm3, 0, %v1205_v54  ;;  %v159_v32 = vand.u32 3, %v158_v10 }
  0xda   :  { %vm1186_vm5 = vcmp.lt.s32.totalorder %v1185_v36, 0  ;;  %v333_v49 = vadd.s32 %v332_v52, %v328_v16  ;;  %v225_v3 = vadd.s32 %v1650_v26, %v1641_v19  ;;  %v1209_v14 = vadd.s32 4294967294, %v858_v47 }
  0xdb   :  { %v240_v7 = vsel %vm1186_vm5, 0, %v1185_v36  ;;  %v762_v42 = vsub.s32 4294967266, %v757_v12  ;;  %vm164_vm6 = vcmp.eq.s32.totalorder %v159_v32, 2  ;;  %vm161_vm7 = vcmp.eq.s32.totalorder %v159_v32, 0 }
  0xdc   :  { %v241_v51 = vsub.s32 32, %v240_v7  ;;  %v245_v35 = vsub.s32 4294967266, %v240_v7  ;;  %v334_v6 = vadd.s32 536870912, %v333_v49  ;;  %v242_v37 = vshll.u32 %v233_v40, %v240_v7 }
  0xdd   :  { %vm1210_vm8 = vcmp.lt.s32.totalorder %v1209_v14, 0  ;;  %vm160_vm9 = vcmp.lt.s32.totalorder %v159_v32, 2  ;;  %vm157_vm10 = vweird.f32 %v1329_v5  ;;  %v763_v61 = vadd.s32 127, %v762_v42 }
  0xde   :  { %v243_v25 = vshrl.u32 %v225_v3, %v241_v51  ;;  %v246_v31 = vadd.s32 127, %v245_v35  ;;  %v1734_v33 = vshrl.u32 %v334_v6, 30  ;;  %v861_v54 = vsel %vm1210_vm8, 0, %v1209_v14 }
  0xdf   :  { %v758_v55 = vsub.s32 32, %v757_v12  ;;  %v255_v1 = vsub.s32 4, %v1686_v30  ;;  %v742_v9 = vadd.s32 %v1471_v21, %v1468_v20  ;;  %v764_v8 = vshll.u32 %v763_v61, 23 }
  0xe0   :  { %v244_v19 = vor.u32 %v243_v25, %v242_v37  ;;  %v247_v26 = vshll.u32 %v246_v31, 23  ;;  %v336_v40 = vshll.u32 %v1734_v33, 30  ;;  %v866_v10 = vsub.s32 4294967266, %v861_v54 }
  0xe1   :  { %vm171_vm11 = vcmp.lt.s32.totalorder %v1341_v11, 0  ;;  %v760_v47 = vshrl.u32 %v742_v9, %v758_v55  ;;  %vm170_vm12 = vcmp.le.f32.partialorder %v169_v46, 0.7853982  ;;  %v759_v3 = vshll.u32 %v1625_v0, %v757_v12 }
  0xe2   :  { %v1729_v38 = vpop.eup %1251  ;;  %v248_v59 = vor.u32 4788187, %v247_v26  ;;  %v337_v34 = vsub.s32 %v333_v49, %v336_v40  ;;  %v251_v29 = vcvt.s32.f32 %v244_v19  ;;  %v256_v7 = vsel %vm171_vm11, %v255_v1, %v1686_v30 }
  0xe3   :  { %v1731_v50 = vpop.eup %1253  ;;  %v165_v22 = vxor.u32 2147483648, %v1729_v38  ;;  %v765_v51 = vor.u32 4788187, %v764_v8  ;;  %v867_v20 = vadd.s32 127, %v866_v10  ;;  %v1756_v21 = vsel %vm170_vm12, 0, %v256_v7 }
  0xe4   :  { %v162_v56 = vxor.u32 2147483648, %v1731_v50  ;;  %v249_v44 = vand.u32 2147483647, %v248_v59  ;;  %v339_v63 = vsub.s32 0, %v337_v34  ;;  %v761_v35 = vor.u32 %v760_v47, %v759_v3 }
  0xe5   :  { %v166_v41 = vsel %vm164_vm6, %v165_v22, %v1731_v50  ;;  %v862_v6 = vsub.s32 32, %v861_v54  ;;  %v329_v46 = vadd.s32 %v1704_v45, %v1715_v57  ;;  %v766_v25 = vand.u32 2147483647, %v765_v51 }
  0xe6   :  { %v163_v39 = vsel %vm161_vm7, %v1729_v38, %v162_v56  ;;  %v252_v62 = vmul.f32 %v251_v29, %v249_v44  ;;  %v1188_v60 = vmin.u32 %v339_v63, %v337_v34  ;;  %v846_v31 = vadd.s32 %v1524_v53, %v1533_v18 }
  0xe7   :  { %v167_v58 = vsel %vm160_vm9, %v163_v39, %v166_v41  ;;  %v868_v0 = vshll.u32 %v867_v20, 23  ;;  %v262_v12 = vadd.s32 3, %v1756_v21  ;;  %v768_v41 = vcvt.s32.f32 %v761_v35 }
  0xe8   :  { %v168_v43 = vsel %vm157_vm10, nan, %v167_v58  ;;  %v253_v36 = vxor.u32 2147483648, %v252_v62  ;;  %v341_v16 = vclz %v1188_v60  ;;  %v864_v40 = vshrl.u32 %v846_v31, %v862_v6 }
  0xe9   :  { %1108 = vxpose.xlu1.b32.start [1/9] (short) %v168_v43, 128  ;;  %v769_v58 = vmul.f32 %v768_v41, %v766_v25  ;;  %v863_v61 = vshll.u32 %v1648_v17, %v861_v54  ;;  %v869_v45 = vor.u32 4788187, %v868_v0  ;;  %v263_v57 = vand.u32 3, %v262_v12 }
  0xea   :  { %v254_v52 = vsel %vm171_vm11, %v253_v36, %v252_v62  ;;  %v1189_v32 = vadd.s32 4294967294, %v341_v16  ;;  %v359_v60 = vsub.s32 4, %v1734_v33  ;;  %vm688_vm2 = vcmp.lt.s32.totalorder %v1354_v23, 0 }
  0xeb   :  { %v257_v49 = vsel %vm170_vm12, %v1341_v11, %v254_v52  ;;  %v865_v29 = vor.u32 %v864_v40, %v863_v61  ;;  %v770_v55 = vxor.u32 2147483648, %v769_v58  ;;  %v870_v62 = vand.u32 2147483647, %v869_v45 }
  0xec   :  { %1255 = vcosq.f32 %v257_v49  ;;  %vm1190_vm13 = vcmp.lt.s32.totalorder %v1189_v32, 0  ;;  %vm268_vm14 = vcmp.eq.s32.totalorder %v263_v57, 2  ;;  %vm265_vm15 = vcmp.eq.s32.totalorder %v263_v57, 0 }
  0xed   :  { %1257 = vsinq.f32 %v257_v49  ;;  %v344_v14 = vsel %vm1190_vm13, 0, %v1189_v32  ;;  %v872_v9 = vcvt.s32.f32 %v865_v29  ;;  %vm264_vm1 = vcmp.lt.s32.totalorder %v263_v57, 2 }
  0xee   :  { %v345_v37 = vsub.s32 32, %v344_v14  ;;  %v349_v30 = vsub.s32 4294967266, %v344_v14  ;;  %v346_v42 = vshll.u32 %v337_v34, %v344_v14  ;;  %vm261_vm3 = vweird.f32 %v1341_v11 }
  0xef   :  { %v771_v16 = vsel %vm688_vm2, %v770_v55, %v769_v58  ;;  %v873_v47 = vmul.f32 %v872_v9, %v870_v62  ;;  %vm275_vm4 = vcmp.lt.s32.totalorder %v1358_v28, 0  ;;  %vm274_vm5 = vcmp.le.f32.partialorder %v273_v13, 0.7853982 }
  0xf0   :  { %v347_v19 = vshrl.u32 %v329_v46, %v345_v37  ;;  %v350_v26 = vadd.s32 127, %v349_v30  ;;  %v360_v49 = vsel %vm275_vm4, %v359_v60, %v1734_v33  ;;  %vm1790_vm6 = vcmp.le.f32.partialorder %v686_v27, 0.7853982 }
  0xf1   :  { %v774_v51 = vsel %vm1790_vm6, %v1354_v23, %v771_v16  ;;  %v874_v20 = vxor.u32 2147483648, %v873_v47  ;;  %v362_v35 = vsel %vm274_vm5, 0, %v360_v49  ;;  %vm792_vm7 = vcmp.lt.s32.totalorder %v1346_v15, 0 }
  0xf2   :  { %v348_v39 = vor.u32 %v347_v19, %v346_v42  ;;  %v351_v59 = vshll.u32 %v350_v26, 23  ;;  %v366_v13 = vadd.s32 3, %v362_v35  ;;  %v772_v33 = vsub.s32 4, %v1602_v2 }
  0xf3   :  { %v875_v27 = vsel %vm792_vm7, %v874_v20, %v873_v47  ;;  %v470_v6 = vand.u32 3, %v1712_v48  ;;  %vm1804_vm8 = vcmp.le.f32.partialorder %v790_v24, 0.7853982  ;;  %v573_v31 = vand.u32 3, %v1756_v21 }
  0xf4   :  { %v352_v43 = vor.u32 4788187, %v351_v59  ;;  %v355_v63 = vcvt.s32.f32 %v348_v39  ;;  %v367_v46 = vand.u32 3, %v366_v13  ;;  %v773_v37 = vsel %vm688_vm2, %v772_v33, %v1602_v2 }
  0xf5   :  { %v878_v30 = vsel %vm1804_vm8, %v1346_v15, %v875_v27  ;;  %v876_v48 = vsub.s32 4, %v1627_v4  ;;  %vm472_vm9 = vcmp.eq.s32.totalorder %v470_v6, 0  ;;  %v775_v24 = vsel %vm1790_vm6, 0, %v773_v37 }
  0xf6   :  { %v1764_v44 = vpop.eup %1255  ;;  %v353_v34 = vand.u32 2147483647, %v352_v43  ;;  %vm372_vm11 = vcmp.eq.s32.totalorder %v367_v46, 2  ;;  %vm475_vm12 = vcmp.eq.s32.totalorder %v470_v6, 2  ;;  %vm369_vm13 = vcmp.eq.s32.totalorder %v367_v46, 0 }
  0xf7   :  { %v1766_v53 = vpop.eup %1257  ;;  %v269_v18 = vxor.u32 2147483648, %v1764_v44  ;;  %v474_v21 = vsel %vm472_vm9, %v1729_v38, %v162_v56  ;;  %v477_v26 = vsel %vm475_vm12, %v165_v22, %v1731_v50  ;;  %v779_v39 = vadd.s32 3, %v775_v24 }
  0xf8   :  { %v266_v1 = vxor.u32 2147483648, %v1766_v53  ;;  %v356_v54 = vmul.f32 %v355_v63, %v353_v34  ;;  %v877_v59 = vsel %vm792_vm7, %v876_v48, %v1627_v4  ;;  %vm575_vm2 = vcmp.eq.s32.totalorder %v573_v31, 0 }
  0xf9   :  { %v270_v17 = vsel %vm268_vm14, %v269_v18, %v1766_v53  ;;  %vm368_vm14 = vcmp.lt.s32.totalorder %v367_v46, 2  ;;  %v676_v45 = vand.u32 3, %v362_v35  ;;  %v987_v38 = vand.u32 3, %v775_v24 }
  0xfa   :  { %v267_v8 = vsel %vm265_vm15, %v1764_v44, %v266_v1  ;;  %v357_v36 = vxor.u32 2147483648, %v356_v54  ;;  %vm365_vm15 = vweird.f32 %v1358_v28  ;;  %v879_v57 = vsel %vm1804_vm8, 0, %v877_v59 }
  0xfb   :  { %v271_v10 = vsel %vm264_vm1, %v267_v8, %v270_v17  ;;  %vm471_vm1 = vcmp.lt.s32.totalorder %v470_v6, 2  ;;  %v577_v4 = vsel %vm575_vm2, %v1764_v44, %v266_v1  ;;  %v780_v29 = vand.u32 3, %v779_v39 }
  0xfc   :  { %v272_v52 = vsel %vm261_vm3, nan, %v271_v10  ;;  %v358_v7 = vsel %vm275_vm4, %v357_v36, %v356_v54  ;;  %v478_v61 = vsel %vm471_vm1, %v474_v21, %v477_v26  ;;  %vm578_vm4 = vcmp.eq.s32.totalorder %v573_v31, 2 }
  0xfd   :  { %1109 = vxpose.xlu1.b32.cont [2/9] (short) %v272_v52, 128  ;;  %v361_v32 = vsel %vm274_vm5, %v1358_v28, %v358_v7  ;;  %v580_v43 = vsel %vm578_vm4, %v269_v18, %v1766_v53  ;;  %v479_v34 = vsel %vm157_vm10, nan, %v478_v61  ;;  %vm574_vm5 = vcmp.lt.s32.totalorder %v573_v31, 2 }
  0xfe   :  { %1259 = vcosq.f32 %v361_v32  ;;  %vm678_vm6 = vcmp.eq.s32.totalorder %v676_v45, 0  ;;  %vm989_vm7 = vcmp.eq.s32.totalorder %v987_v38, 0  ;;  %vm992_vm9 = vcmp.eq.s32.totalorder %v987_v38, 2 }
  0xff   :  { %1261 = vsinq.f32 %v361_v32  ;;  %v883_v63 = vadd.s32 3, %v879_v57  ;;  %v581_v62 = vsel %vm574_vm5, %v577_v4, %v580_v43  ;;  %vm681_vm8 = vcmp.eq.s32.totalorder %v676_v45, 2 }
 0x100   :  { %1263 = vcosq.f32 %v774_v51  ;;  %vm785_vm12 = vcmp.eq.s32.totalorder %v780_v29, 2  ;;  %v1090_v5 = vand.u32 3, %v879_v57  ;;  %v582_v53 = vsel %vm261_vm3, nan, %v581_v62 }
 0x101   :  { %1265 = vsinq.f32 %v774_v51  ;;  %v884_v10 = vand.u32 3, %v883_v63  ;;  %vm778_vm10 = vweird.f32 %v1354_v23  ;;  %vm781_vm1 = vcmp.lt.s32.totalorder %v780_v29, 2 }
 0x102   :  { %1267 = vcosq.f32 %v878_v30  ;;  %vm1092_vm2 = vcmp.eq.s32.totalorder %v1090_v5, 0  ;;  %vm1095_vm5 = vcmp.eq.s32.totalorder %v1090_v5, 2 }
 0x103   :  { %1269 = vsinq.f32 %v878_v30  ;;  %vm886_vm4 = vcmp.eq.s32.totalorder %v884_v10, 0  ;;  %vm889_vm3 = vcmp.eq.s32.totalorder %v884_v10, 2 }
 0x108   :  { %v1260_v25 = vpop.eup %1259 }
 0x109   :  { %v1262_v0 = vpop.eup %1261  ;;  %v373_v12 = vxor.u32 2147483648, %v1260_v25 }
 0x10a   :  { %v370_v42 = vxor.u32 2147483648, %v1262_v0  ;;  %v1264_v2 = vpop.eup %1263 }
 0x10b   :  { %v374_v19 = vsel %vm372_vm11, %v373_v12, %v1262_v0  ;;  %v1266_v41 = vpop.eup %1265  ;;  %v786_v22 = vxor.u32 2147483648, %v1264_v2  ;;  %v683_v9 = vsel %vm681_vm8, %v373_v12, %v1262_v0  ;;  %vm782_vm11 = vcmp.eq.s32.totalorder %v780_v29, 0 }
 0x10c   :  { %v371_v40 = vsel %vm369_vm13, %v1260_v25, %v370_v42  ;;  %v783_v50 = vxor.u32 2147483648, %v1266_v41  ;;  %v1268_v55 = vpop.eup %1267  ;;  %v680_v60 = vsel %vm678_vm6, %v1260_v25, %v370_v42  ;;  %vm677_vm13 = vcmp.lt.s32.totalorder %v676_v45, 2 }
 0x10d   :  { %v375_v58 = vsel %vm368_vm14, %v371_v40, %v374_v19  ;;  %v994_v54 = vsel %vm992_vm9, %v786_v22, %v1266_v41  ;;  %v1270_v1 = vpop.eup %1269  ;;  %vm988_vm14 = vcmp.lt.s32.totalorder %v987_v38, 2  ;;  %v787_v18 = vsel %vm785_vm12, %v786_v22, %v1266_v41 }
 0x10e   :  { %v376_v56 = vsel %vm365_vm15, nan, %v375_v58  ;;  %v991_v17 = vsel %vm989_vm7, %v1264_v2, %v783_v50  ;;  %v784_v44 = vsel %vm782_vm11, %v1264_v2, %v783_v50  ;;  %v684_v36 = vsel %vm677_vm13, %v680_v60, %v683_v9 }
 0x10f   :  { %1110 = vxpose.xlu1.b32.cont [3/9] (short) %v376_v56, 128  ;;  %v995_v8 = vsel %vm988_vm14, %v991_v17, %v994_v54  ;;  %v887_v16 = vxor.u32 2147483648, %v1270_v1  ;;  %v890_v47 = vxor.u32 2147483648, %v1268_v55  ;;  %v788_v52 = vsel %vm781_vm1, %v784_v44, %v787_v18 }
 0x110   :  { %v996_v7 = vsel %vm778_vm10, nan, %v995_v8  ;;  %v685_v49 = vsel %vm365_vm15, nan, %v684_v36  ;;  %vm885_vm6 = vcmp.lt.s32.totalorder %v884_v10, 2  ;;  %vm1091_vm7 = vcmp.lt.s32.totalorder %v1090_v5, 2 }
 0x111   :  { %v888_v11 = vsel %vm886_vm4, %v1268_v55, %v887_v16  ;;  %v891_v32 = vsel %vm889_vm3, %v890_v47, %v1270_v1  ;;  %v1094_v3 = vsel %vm1092_vm2, %v1268_v55, %v887_v16  ;;  %v1097_v51 = vsel %vm1095_vm5, %v890_v47, %v1270_v1 }
 0x112   :  { %v789_v20 = vsel %vm778_vm10, nan, %v788_v52  ;;  %v1102_v35 = vrot.slane %v996_v7, 4  ;;  %v892_v13 = vsel %vm885_vm6, %v888_v11, %v891_v32  ;;  %v1098_v33 = vsel %vm1091_vm7, %v1094_v3, %v1097_v51 }
 0x113   :  { %1111 = vxpose.xlu1.b32.cont [4/9] (short) %v479_v34, 128  ;;  %vm882_vm9 = vweird.f32 %v1346_v15  ;;  %vm1140_vm15 = vcmask 588800  }
 0x114   :  { %v893_v28 = vsel %vm882_vm9, nan, %v892_v13  ;;  %v1099_v27 = vsel %vm882_vm9, nan, %v1098_v33 }
 0x115   :  { %v1107_v6 = vsel %vm63_vm0, %v893_v28, %v1102_v35  ;;  %v1103_v14 = vrot.slane %v1099_v27, 4 }
 0x117   :  { %1112 = vxpose.xlu1.b32.cont [5/9] (short) %v582_v53, 128  ;;  %v1104_v46 = vsel %vm63_vm0, %v1102_v35, %v1103_v14 }
 0x11b   :  { %1113 = vxpose.xlu1.b32.cont [6/9] (short) %v685_v49, 128 }
 0x11f   :  { %1114 = vxpose.xlu1.b32.cont [7/9] (short) %v789_v20, 128 }
 0x123   :  { %1115 = vxpose.xlu1.b32.cont [8/9] (short) %v1107_v6, 128 }
 0x127   :  { %1116 = vxpose.xlu1.b32.end [9/9] (short) %v1104_v46, 128 }
 0x187   :  { %v1124_v37 = vpop.trf.xlu1 }
 0x188   :  { %1141 = vst.msk [vmem:[#allocation2] sm:$0xff] %vm1140_vm15, %v1124_v37 }
 0x18b   :  { %v1125_v23 = vpop.trf.xlu1 }
 0x18c   :  { %1142 = vst.msk [vmem:[#allocation2 + $0x8] sm:$0xff] %vm1140_vm15, %v1125_v23 }
 0x18f   :  { %v1126_v30 = vpop.trf.xlu1 }
 0x190   :  { %1143 = vst.msk [vmem:[#allocation2 + $0x10] sm:$0xff] %vm1140_vm15, %v1126_v30 }
 0x193   :  { %v1127_v15 = vpop.trf.xlu1 }
 0x194   :  { %1144 = vst.msk [vmem:[#allocation2 + $0x18] sm:$0xff] %vm1140_vm15, %v1127_v15 }
 0x197   :  { %v1128_v25 = vpop.trf.xlu1 }
 0x198   :  { %1145 = vst.msk [vmem:[#allocation2 + $0x20] sm:$0xff] %vm1140_vm15, %v1128_v25 }
 0x19b   :  { %v1129_v31 = vpop.trf.xlu1 }
 0x19c   :  { %1146 = vst.msk [vmem:[#allocation2 + $0x28] sm:$0xff] %vm1140_vm15, %v1129_v31 }
 0x19f   :  { %v1130_v48 = vpop.trf.xlu1 }
 0x1a0   :  { %1147 = vst.msk [vmem:[#allocation2 + $0x30] sm:$0xff] %vm1140_vm15, %v1130_v48 }
 0x1a3   :  { %v1131_v0 = vpop.trf.xlu1 }
 0x1a4   :  { %1148 = vst.msk [vmem:[#allocation2 + $0x38] sm:$0xff] %vm1140_vm15, %v1131_v0 }
 0x1a7   :  { %v1132_v12 = vpop.trf.xlu1 }
 0x1a8   :  { %1149 = vst.msk [vmem:[#allocation2 + $0x40] sm:$0xff] %vm1140_vm15, %v1132_v12 }
 0x1ab   :  { %v1133_v24 = vpop.trf.xlu1 }
 0x1ac   :  { %1150 = vst.msk [vmem:[#allocation2 + $0x48] sm:$0xff] %vm1140_vm15, %v1133_v24 }
 0x1af   :  { %v1134_v42 = vpop.trf.xlu1 }
 0x1b0   :  { %1151 = vst.msk [vmem:[#allocation2 + $0x50] sm:$0xff] %vm1140_vm15, %v1134_v42 }
 0x1b3   :  { %v1135_v2 = vpop.trf.xlu1 }
 0x1b4   :  { %1152 = vst.msk [vmem:[#allocation2 + $0x58] sm:$0xff] %vm1140_vm15, %v1135_v2 }
 0x1b7   :  { %v1136_v19 = vpop.trf.xlu1 }
 0x1b8   :  { %1153 = vst.msk [vmem:[#allocation2 + $0x60] sm:$0xff] %vm1140_vm15, %v1136_v19 }
 0x1bb   :  { %v1137_v21 = vpop.trf.xlu1 }
 0x1bc   :  { %1154 = vst.msk [vmem:[#allocation2 + $0x68] sm:$0xff] %vm1140_vm15, %v1137_v21 }
 0x1bf   :  { %v1138_v26 = vpop.trf.xlu1 }
 0x1c0   :  { %1155 = vst.msk [vmem:[#allocation2 + $0x70] sm:$0xff] %vm1140_vm15, %v1138_v26 }
 0x1c3   :  { %v1139_v41 = vpop.trf.xlu1 }
 0x1c4   :  { %1156 = vst.msk [vmem:[#allocation2 + $0x78] sm:$0xff] %vm1140_vm15, %v1139_v41 }
 0x1c5   :  { %1161 = vsyncadd [#allocation3], 1536  ;;  %s1302_s1 = smov [#allocation2]  }
 0x1c6   :  { %s1162_s24 = sshll.u32 %s1302_s1, 4  ;;  %s1163_s24 = int_to_ptr.vmem [resolvable:$true] %s1162_s24 }
 0x1c7   :  { %s1271_s25 = scalar_lea.vmem %s1163_s24, 512  ;;  %s1275_s26 = scalar_lea.vmem %s1163_s24, 2048 }
 0x1c8   :  { %p1272_p0 = scmp.ne.s32.totalorder %s1163_s24, %s1271_s25  ;;  %p1276_p1 = scmp.lt.s32.totalorder %s1163_s24, %s1163_s24 }
 0x1c9   :  { %p1277_p2 = scmp.lt.s32.totalorder %s1275_s26, %s1271_s25 }
 0x1cb   :  { %p1278_p3 = por %p1277_p2, %p1276_p1 }
 0x1cd   :  { %p1279_p4 = pnand %p1278_p3, %p1272_p0 }
 0x1cf   :  { %1282 = shalt.err (!%p1279_p4)
}
 0x1d0   :  { %s1283_s29 = scalar_lea.hbm %s1882_s2, 512 }
 0x1d1   :  { %p1284_p5 = scmp.ne.s32.totalorder %s1882_s2, %s1283_s29  ;;  %p1287_p6 = scmp.lt.u32.totalorder %s1283_s29, %s1882_s2 }
 0x1d3   :  { %p1289_p7 = pnand %p1287_p6, %p1284_p5 }
 0x1d5   :  { %1292 = shalt.err (!%p1289_p7)
}
 0x1d6   :  { %s1303_s6 = smov 128   ;;  %s1304_s7 = smov 8  }
 0x1d7   :  { %1168 = dma.vmem_to_hbm [thread:$0]  %s1163_s24, 512, %s1882_s2, [#allocation3], %s1303_s6, %s1303_s6, %s1304_s7  }
 0x1d8   :  { %1293 = dma.done.wait [#allocation3], 2048  }
 0x1d9   :  { %1294 = vsyncadd [#allocation3], 4294965248 }
 0x1da   :  { %1172 = vsyncpa [#allocation3], 1 }

</bundles_post_ra>
